<compile_context>
chip_gen: v7x
topology: tpu7x:2x2x1
jax: 0.10.0
libtpu: 0.0.40
codegen_flags: <defaults>
</compile_context>

<pallas_src>
import functools

import jax
import jax.numpy as jnp
from jax import lax
from jax.experimental import pallas as pl
from jax.experimental.pallas import tpu as pltpu

LANE = 128
SUBLANE = 8
# (4096, 128) f32 = 2 MiB per input block; 2 inputs x 2 buffers = 8 MiB VMEM,
# safe on v5e/v6e/v7x without any vmem_limit flags.
MAX_TILE_ROWS = 4096
NUM_CORE_SPLITS = 2  # leading "parallel" grid axis (uses both v7x TCs)


def _fold_to_vreg(x, rows):
    """(rows, 128) -> (8, 128) via vreg-wise VPU adds (cheap), so the single
    expensive cross-lane reduce only ever sees an (8, 128) tile."""
    if rows % SUBLANE == 0 and rows > SUBLANE:
        return jnp.sum(x.reshape(rows // SUBLANE, SUBLANE, LANE), axis=0)
    return x


def _loss_kernel_single(p_ref, t_ref, out_ref):
    """Whole problem in one block: one DMA per input, fold, one reduce."""
    d = p_ref[...].astype(jnp.float32) - t_ref[...].astype(jnp.float32)
    contrib = d * d + jnp.abs(d)
    out_ref[0, 0] = jnp.sum(_fold_to_vreg(contrib, contrib.shape[0]))


def _loss_kernel_tiled(p_ref, t_ref, out_ref, acc_ref, *, tile_rows,
                       total_rows, steps_per_core, needs_mask):
    """Tiled accumulation of sum((p-t)^2 + |p-t|), one partial sum per core.

    acc_ref is a per-core (8, 128) f32 VMEM accumulator: steady-state steps do
    only VPU elementwise work; the ragged/out-of-range mask runs only on the
    tail block(s); the single cross-lane reduce happens once per core.
    """
    i = pl.program_id(1)

    @pl.when(i == 0)
    def _():
        acc_ref[...] = jnp.zeros_like(acc_ref)

    d = p_ref[...].astype(jnp.float32) - t_ref[...].astype(jnp.float32)
    contrib = d * d + jnp.abs(d)  # fused single accumulation term

    if needs_mask:
        # Logical (unclamped) block index; only blocks that extend past the
        # true row count need masking. Everything else stays unmasked.
        block = pl.program_id(0) * steps_per_core + i
        num_full_blocks = total_rows // tile_rows

        @pl.when(block < num_full_blocks)
        def _():
            acc_ref[...] += _fold_to_vreg(contrib, tile_rows)

        @pl.when(block >= num_full_blocks)
        def _():
            row_ids = block * tile_rows + lax.broadcasted_iota(
                jnp.int32, contrib.shape, 0)
            masked = jnp.where(row_ids < total_rows, contrib, 0.0)
            acc_ref[...] += _fold_to_vreg(masked, tile_rows)
    else:
        acc_ref[...] += _fold_to_vreg(contrib, tile_rows)

    @pl.when(i == pl.num_programs(1) - 1)
    def _():
        out_ref[0, 0] = jnp.sum(acc_ref[...])


def regression_loss(pred, target):
    """loss = mean((pred-target)^2) + mean(|pred-target|), scalar f32."""
    assert pred.shape == target.shape
    n = pred.size
    itemsize = jnp.dtype(pred.dtype).itemsize

    # No dtype pre-cast here: DMA the original dtype, cast on the VPU.
    flat_p = pred.reshape(-1)
    flat_t = target.reshape(-1)

    # Pad with zeros (contribute 0 to both sums) only when not lane-aligned,
    # and only up to the next lane. Typical NN shapes take the no-copy path.
    rem = n % LANE
    if rem:
        pad = LANE - rem
        flat_p = jnp.pad(flat_p, (0, pad))
        flat_t = jnp.pad(flat_t, (0, pad))

    rows = flat_p.size // LANE
    p2 = flat_p.reshape(rows, LANE)
    t2 = flat_t.reshape(rows, LANE)

    cost = pl.CostEstimate(flops=5 * n, transcendentals=0,
                           bytes_accessed=2 * n * itemsize + 8)

    if rows <= MAX_TILE_ROWS:
        # Small/medium input: single grid step, full-array block.
        out = pl.pallas_call(
            _loss_kernel_single,
            out_shape=jax.ShapeDtypeStruct((1, 1), jnp.float32),
            grid_spec=pltpu.PrefetchScalarGridSpec(
                num_scalar_prefetch=0,
                grid=(1,),
                in_specs=[
                    pl.BlockSpec((rows, LANE), lambda i: (0, 0)),
                    pl.BlockSpec((rows, LANE), lambda i: (0, 0)),
                ],
                out_specs=pl.BlockSpec(
                    (1, 1), lambda i: (0, 0), memory_space=pltpu.SMEM
                ),
            ),
            cost_estimate=cost,
        )(p2, t2)
        total = out[0, 0]
    else:
        tile_rows = MAX_TILE_ROWS
        num_blocks = pl.cdiv(rows, tile_rows)          # >= 2 here
        steps_per_core = pl.cdiv(num_blocks, NUM_CORE_SPLITS)
        padded_blocks = NUM_CORE_SPLITS * steps_per_core
        # Mask only when the last real block is ragged or when the 2-way split
        # creates logical blocks past the end (odd number of blocks).
        needs_mask = (rows % tile_rows != 0) or (padded_blocks != num_blocks)

        if padded_blocks != num_blocks:
            # Clamp out-of-range logical blocks to the last valid block so the
            # auto-DMA stays in bounds; the in-kernel mask zeroes them fully.
            def in_map(c, i):
                return (jnp.minimum(c * steps_per_core + i, num_blocks - 1), 0)
        else:
            def in_map(c, i):
                return (c * steps_per_core + i, 0)

        kernel = functools.partial(
            _loss_kernel_tiled, tile_rows=tile_rows, total_rows=rows,
            steps_per_core=steps_per_core, needs_mask=needs_mask)

        out = pl.pallas_call(
            kernel,
            out_shape=jax.ShapeDtypeStruct((NUM_CORE_SPLITS, 1), jnp.float32),
            grid_spec=pltpu.PrefetchScalarGridSpec(
                num_scalar_prefetch=0,
                grid=(NUM_CORE_SPLITS, steps_per_core),
                in_specs=[
                    pl.BlockSpec((tile_rows, LANE), in_map),
                    pl.BlockSpec((tile_rows, LANE), in_map),
                ],
                out_specs=pl.BlockSpec(
                    (1, 1), lambda c, i: (c, 0), memory_space=pltpu.SMEM
                ),
                scratch_shapes=[pltpu.VMEM((SUBLANE, LANE), jnp.float32)],
            ),
            compiler_params=pltpu.CompilerParams(
                dimension_semantics=("parallel", "arbitrary")
            ),
            cost_estimate=cost,
        )(p2, t2)
        total = out[0, 0] + out[1, 0]

    return total / jnp.float32(n)


if __name__ == "__main__":
    key = jax.random.PRNGKey(0)
    kp, kt = jax.random.split(key)

    # Primary example: regression head output, NCHW [2, 4, 16, 16]
    pred = jax.random.normal(kp, (2, 4, 16, 16), dtype=jnp.float32)
    target = jax.random.normal(kt, (2, 4, 16, 16), dtype=jnp.float32)

    loss = regression_loss(pred, target)
    jax.block_until_ready(loss)

    d = pred - target
    ref = jnp.mean(d * d) + jnp.mean(jnp.abs(d))
    assert jnp.allclose(loss, ref, rtol=1e-5, atol=1e-5), (loss, ref)

    # Extra self-checks:
    #   (2, 3, 5, 7)        -> lane-padding fallback
    #   (2, 4, 128, 256)    -> large single-block path
    #   (2, 4, 128, 1524)   -> tiled path, odd #blocks + ragged tail (mask on)
    #   (4, 8, 256, 512)    -> tiled path, even #blocks, no masking
    for shape in [(2, 3, 5, 7), (2, 4, 128, 256),
                  (2, 4, 128, 1524), (4, 8, 256, 512)]:
        k1, k2 = jax.random.split(jax.random.fold_in(key, sum(shape)))
        p = jax.random.normal(k1, shape, dtype=jnp.float32)
        t = jax.random.normal(k2, shape, dtype=jnp.float32)
        got = regression_loss(p, t)
        jax.block_until_ready(got)
        dd = p - t
        want = jnp.mean(dd * dd) + jnp.mean(jnp.abs(dd))
        assert jnp.allclose(got, want, rtol=1e-4, atol=1e-5), (shape, got, want)

    print("KERNEL_OK")
</pallas_src>

<mosaic_0001>
module attributes {stable_mosaic.version = 11 : i64} {
  func.func @_loss_kernel_single(%arg0: i32, %arg1: memref<16x128xf32, #tpu.memory_space<vmem>>, %arg2: memref<16x128xf32, #tpu.memory_space<vmem>>, %arg3: memref<1x1xf32, #tpu.memory_space<smem>>) attributes {dimension_semantics = [#tpu.dimension_semantics<arbitrary>], iteration_bounds = array<i64: 1>, scalar_prefetch = 0 : i64, scratch_operands = 0 : i64, tpu.core_type = #tpu.core_type<tc>, window_params = [{pipeline_mode = #tpu.pipeline_mode<synchronous>, transform_indices = @transform_0, window_bounds = array<i64: 16, 128>}, {pipeline_mode = #tpu.pipeline_mode<synchronous>, transform_indices = @transform_1, window_bounds = array<i64: 16, 128>}, {transform_indices = @transform_2, window_bounds = array<i64: 1, 1>}]} {
    %c0 = arith.constant 0 : index
    %c0_0 = arith.constant 0 : index
    %0 = vector.load %arg1[%c0, %c0_0] : memref<16x128xf32, #tpu.memory_space<vmem>>, vector<16x128xf32>
    %c0_1 = arith.constant 0 : index
    %c0_2 = arith.constant 0 : index
    %1 = vector.load %arg2[%c0_1, %c0_2] : memref<16x128xf32, #tpu.memory_space<vmem>>, vector<16x128xf32>
    %2 = arith.subf %0, %1 : vector<16x128xf32>
    %3 = arith.mulf %2, %2 : vector<16x128xf32>
    %4 = math.absf %2 : vector<16x128xf32>
    %5 = arith.addf %3, %4 : vector<16x128xf32>
    %6 = vector.shape_cast %5 : vector<16x128xf32> to vector<2x8x128xf32>
    %cst = arith.constant dense<0.000000e+00> : vector<8x128xf32>
    %7 = vector.multi_reduction <add>, %6, %cst [0] : vector<2x8x128xf32> to vector<8x128xf32>
    %8 = vector.shape_cast %7 : vector<8x128xf32> to vector<1x8x128xf32>
    %cst_3 = arith.constant dense<0.000000e+00> : vector<1xf32>
    %9 = vector.multi_reduction <add>, %8, %cst_3 [1, 2] : vector<1x8x128xf32> to vector<1xf32>
    %10 = vector.shape_cast %9 : vector<1xf32> to vector<1x1x1xf32>
    %11 = vector.extract %10[0, 0, 0] : f32 from vector<1x1x1xf32>
    %c0_4 = arith.constant 0 : index
    %c0_5 = arith.constant 0 : index
    %12 = memref.load %arg3[%c0_4, %c0_5] : memref<1x1xf32, #tpu.memory_space<smem>>
    memref.store %11, %arg3[%c0_4, %c0_5] : memref<1x1xf32, #tpu.memory_space<smem>>
    return
  }
  func.func @transform_0(%arg0: i32) -> (i32, i32) {
    %c0_i32 = arith.constant 0 : i32
    %c0_i32_0 = arith.constant 0 : i32
    %c0_i32_1 = arith.constant 0 : i32
    return %c0_i32, %c0_i32_0 : i32, i32
  }
  func.func @transform_1(%arg0: i32) -> (i32, i32) {
    %c0_i32 = arith.constant 0 : i32
    %c0_i32_0 = arith.constant 0 : i32
    %c0_i32_1 = arith.constant 0 : i32
    return %c0_i32, %c0_i32_0 : i32, i32
  }
  func.func @transform_2(%arg0: i32) -> (i32, i32) {
    %c0_i32 = arith.constant 0 : i32
    %c0_i32_0 = arith.constant 0 : i32
    %c0_i32_1 = arith.constant 0 : i32
    return %c0_i32, %c0_i32_0 : i32, i32
  }
}

</mosaic_0001>

<bundles_post_ra>
// kernel: tpu_custom_call.1
= control target key start
LH: loop header
LB: loop body
LE: loop exit
PB: predicated region body
PF: predicated region fallthrough
CT: control target
= control target key end

     0   :  { %7 = vsyncpa [#allocation3], 0  ;;  %s202_s0 = inlined_call_operand.hbm [shape: f32[16,128], index: 0, kind: input, shape index: {}]   ;;  %s203_s1 = inlined_call_operand.hbm [shape: f32[16,128], index: 1, kind: input, shape index: {}]   ;;  %s204_s2 = inlined_call_operand.hbm [shape: f32[1,1], index: 2, kind: output, shape index: {}]  }
   0x1   :  { %8 = vsyncpa [#allocation6], 0 }
   0x2   :  { %9 = vsyncpa [#allocation4], 0  ;;  %s146_s9 = smov [#allocation2]   ;;  %s86_s13 = scalar_lea.hbm %s202_s0, 256 }
   0x3   :  { %s15_s10 = sshll.u32 %s146_s9, 4  ;;  %p87_p0 = scmp.ne.s32.totalorder %s202_s0, %s86_s13  ;;  %s16_s10 = int_to_ptr.vmem [resolvable:$true] %s15_s10 }
   0x4   :  { %p90_p1 = scmp.lt.u32.totalorder %s86_s13, %s202_s0 }
   0x6   :  { %p92_p2 = pnand %p90_p1, %p87_p0 }
   0x8   :  { %95 = shalt.err (!%p92_p2)
}
   0x9   :  { %s96_s18 = scalar_lea.vmem %s16_s10, 256  ;;  %p101_p4 = scmp.lt.s32.totalorder %s16_s10, %s16_s10 }
   0xa   :  { %p97_p3 = scmp.ne.s32.totalorder %s16_s10, %s96_s18  ;;  %p102_p5 = scmp.lt.s32.totalorder %s96_s18, %s96_s18 }
   0xc   :  { %p103_p6 = por %p102_p5, %p101_p4 }
   0xe   :  { %p104_p7 = pnand %p103_p6, %p97_p3 }
  0x10   :  { %107 = shalt.err (!%p104_p7)
}
  0x11   :  { %s147_s19 = smov 128   ;;  %s148_s20 = smov 8  }
  0x12   :  { %21 = dma.hbm_to_vmem [thread:$0]  %s202_s0, 256, %s16_s10, [#allocation3], %s147_s19, %s147_s19, %s148_s20  }
  0x13   :  { %s149_s23 = smov [#allocation5]   ;;  %s108_s27 = scalar_lea.hbm %s203_s1, 256 }
  0x14   :  { %s27_s24 = sshll.u32 %s149_s23, 4  ;;  %p109_p8 = scmp.ne.s32.totalorder %s203_s1, %s108_s27  ;;  %s28_s24 = int_to_ptr.vmem [resolvable:$true] %s27_s24 }
  0x15   :  { %p112_p9 = scmp.lt.u32.totalorder %s108_s27, %s203_s1 }
  0x17   :  { %p114_p10 = pnand %p112_p9, %p109_p8 }
  0x19   :  { %117 = shalt.err (!%p114_p10)
}
  0x1a   :  { %s118_s4 = scalar_lea.vmem %s28_s24, 256  ;;  %p123_p12 = scmp.lt.s32.totalorder %s28_s24, %s28_s24 }
  0x1b   :  { %p119_p11 = scmp.ne.s32.totalorder %s28_s24, %s118_s4  ;;  %p124_p13 = scmp.lt.s32.totalorder %s118_s4, %s118_s4 }
  0x1d   :  { %p125_p0 = por %p124_p13, %p123_p12 }
  0x1f   :  { %p126_p1 = pnand %p125_p0, %p119_p11 }
  0x21   :  { %129 = shalt.err (!%p126_p1)
}
  0x22   :  { %33 = dma.hbm_to_vmem [thread:$0]  %s203_s1, 256, %s28_s24, [#allocation6], %s147_s19, %s147_s19, %s148_s20  }
  0x23   :  { %140 = dma.done.wait [#allocation3], 256  }
  0x24   :  { %141 = vsyncadd [#allocation3], 4294967040 }
  0x25   :  { %142 = dma.done.wait [#allocation6], 256  }
  0x26   :  { %143 = vsyncadd [#allocation6], 4294967040  ;;  %v40_v0 = vld [vmem:[#allocation2] sm:$0xff]  ;;  %v41_v1 = vld [vmem:[#allocation2 + $0x8] sm:$0xff]  ;;  %s130_s8 = scalar_lea.hbm %s204_s2, 16 }
  0x27   :  { %v42_v2 = vld [vmem:[#allocation5] sm:$0xff]  ;;  %v43_v3 = vld [vmem:[#allocation5 + $0x8] sm:$0xff]  ;;  %p131_p2 = scmp.ne.s32.totalorder %s204_s2, %s130_s8  ;;  %p134_p3 = scmp.lt.u32.totalorder %s130_s8, %s204_s2 }
  0x28   :  { %v44_v4 = vsub.f32 %v40_v0, %v42_v2  ;;  %v45_v5 = vsub.f32 %v41_v1, %v43_v3 }
  0x29   :  { %p136_p4 = pnand %p134_p3, %p131_p2 }
  0x2a   :  { %v46_v6 = vmul.f32 %v44_v4, %v44_v4  ;;  %v48_v7 = vand.u32 2147483647, %v44_v4  ;;  %v47_v8 = vmul.f32 %v45_v5, %v45_v5  ;;  %v49_v9 = vand.u32 2147483647, %v45_v5 }
  0x2c   :  { %v50_v10 = vadd.f32 %v48_v7, %v46_v6  ;;  %v51_v11 = vadd.f32 %v49_v9, %v47_v8 }
  0x2e   :  { %v52_v12 = vadd.f32 %v51_v11, %v50_v10 }
  0x30   :  { %53 = vadd.xlane.f32.xlu0 %v52_v12 }
  0xbd   :  { %v54_v13 = vpop.xlane.xlu0 %53 }
  0xbe   :  { %v55_v14 = vrot.slane %v54_v13, 4 }
  0xc0   :  { %v56_v15 = vadd.f32 %v55_v14, %v54_v13 }
  0xc2   :  { %v57_v16 = vrot.slane %v56_v15, 2 }
  0xc4   :  { %v58_v17 = vadd.f32 %v57_v16, %v56_v15 }
  0xc6   :  { %v59_v18 = vrot.slane %v58_v17, 1 }
  0xc8   :  { %v60_v19 = vadd.f32 %v59_v18, %v58_v17 }
  0xca   :  { %79 = vpush %v60_v19 }
  0xfb   :  { %s80_s1 = spop %79 }
  0xfc   :  { %63 = sst [smem:[#allocation7]] %s80_s1 }
  0xfd   :  { %139 = shalt.err (!%p136_p4)
}
  0xfe   :  { %s150_s13 = smov [#allocation7]  }
  0xff   :  { %71 = dma.smem_to_hbm %s150_s13, 16, %s204_s2, [#allocation4]  }
 0x100   :  { %144 = dma.done.wait [#allocation4], 16  }
 0x101   :  { %145 = vsyncadd [#allocation4], 4294967280 }
 0x102   :  { %75 = sfence }
 0x103   :  { %76 = vsyncpa [#allocation3], 1 }
 0x104   :  { %77 = vsyncpa [#allocation6], 1 }
 0x105   :  { %78 = vsyncpa [#allocation4], 1 }

</bundles_post_ra>
